<compile_context>
chip_gen: v7x
topology: tpu7x:2x2x1
jax: 0.10.0
libtpu: 0.0.40
codegen_flags: <defaults>
</compile_context>

<pallas_src>
import functools

import jax
import jax.numpy as jnp
import numpy as np
from jax.experimental import pallas as pl
from jax.experimental.pallas import tpu as pltpu

MARGIN = 0.5
OUT_LANES = 128   # lane-dense partial-result slab (lanes 0..5 meaningful)
OUT_SUB = 8       # sublane padding so each output block is a clean (8, 128) tile
SUB = 16          # row/col tile alignment (safe for both f32 and bf16 tiles)


def _round_up(v, m):
    return (v + m - 1) // m * m


def _largest_tile(n_pad, upper):
    """Largest multiple of SUB that is <= upper and divides n_pad."""
    t = max(SUB, (min(upper, n_pad) // SUB) * SUB)
    while n_pad % t:
        t -= SUB
    return t


def _choose_tiles(n, tm_req, tn_req):
    """Pick (tm, tn, n_pad) minimizing padding while keeping (8,128)/lane rules."""
    n16 = _round_up(n, SUB)
    if n16 <= tn_req:                       # whole problem fits one column tile
        return n16, n16, n16
    n_pad = _round_up(n, 128)               # minimal lane-aligned padding
    tn = 128
    c = (tn_req // 128) * 128
    while c >= 128:                         # largest multiple of 128 dividing n_pad
        if n_pad % c == 0:
            tn = c
            break
        c -= 128
    upper = min(tm_req, n_pad // 2)         # keep >= 2 row stripes for v7x megacore
    tm = _largest_tile(n_pad, upper)
    return tm, tn, n_pad


def _footprint_bytes(tm, tn, d_pad, x_bytes):
    """Approximate VMEM footprint (double-buffered inputs + scratch + output)."""
    row = 2 * tm * d_pad * x_bytes                      # resident row tile
    col = 2 * tn * d_pad * x_bytes                      # streamed column tile
    labels = 2 * (tm * 128 * 4) + 2 * (8 * _round_up(tn, 128) * 4)
    acc = tm * 128 * 4                                  # (tm,8) scratch, lane-padded
    out = 2 * OUT_SUB * OUT_LANES * 4
    return row + col + labels + acc + out


def _contrastive_kernel(xr_ref, xc_ref, rlab_ref, clab_ref, out_ref, acc_ref,
                        *, margin, n_actual, tm, tn):
    i = pl.program_id(0)
    j = pl.program_id(1)
    nj = pl.num_programs(1)
    hi = margin + 0.05
    lo = margin - 0.05
    one = jnp.float32(1.0)
    zero = jnp.float32(0.0)

    # ---- per-row-stripe init: zero the lane-packed accumulator ----
    @pl.when(j == 0)
    def _init():
        acc_ref[...] = jnp.zeros_like(acc_ref)

    # ---- similarity tile: A @ B^T (operands pre-normalized in the wrapper) ----
    sim = jax.lax.dot_general(xr_ref[...], xc_ref[...],
                              (((1,), (1,)), ((), ())),
                              preferred_element_type=jnp.float32)     # (tm, tn)

    # ---- masks built from cheap (tm,1)/(1,tn) vectors; no (N,N) iotas ----
    row_idx = i * tm + jax.lax.broadcasted_iota(jnp.int32, (tm, 1), 0)   # (tm, 1)
    col_idx = j * tn + jax.lax.broadcasted_iota(jnp.int32, (1, tn), 1)   # (1, tn)
    cvalid = jnp.where(col_idx < n_actual, one, zero)                    # (1, tn)
    same = jnp.where(rlab_ref[...] == clab_ref[...], one, zero)          # (tm, tn)
    samev = same * cvalid                                                # same & col-valid
    negf = cvalid - samev                                                # ~same & col-valid

    # 1.0 where this tile's column range holds the (valid) diagonal of the row
    on_diag = jnp.where((row_idx >= j * tn) & (row_idx < j * tn + tn)
                        & (row_idx < n_actual), one, zero)               # (tm, 1)
    # scalar: number of valid columns in this tile (pure scalar math, no reduction)
    vcols = jnp.clip(n_actual - j * tn, 0, tn).astype(jnp.float32)

    # ---- 6 consolidated row reductions ----
    d_lo = sim - lo
    d_hi = hi - sim
    cnt_gt_t = jnp.sum(negf * jnp.where(d_lo > 0.0, one, zero), axis=1, keepdims=True)
    nloss_t = jnp.sum(negf * jnp.maximum(d_lo, 0.0), axis=1, keepdims=True)
    ploss_t = jnp.sum(negf * jnp.maximum(d_hi, 0.0), axis=1, keepdims=True)
    scnt_t = jnp.sum(samev, axis=1, keepdims=True)            # same&valid count (incl diag)
    ssum_t = jnp.sum(sim * samev, axis=1, keepdims=True)      # same&valid sim sum (incl diag)
    vsum_t = jnp.sum(sim * cvalid, axis=1, keepdims=True)     # all-valid sim sum

    pos_cnt_t = scnt_t - on_diag
    pos_sum_t = ssum_t - on_diag          # diagonal sim == 1 after normalization
    neg_cnt_t = vcols - scnt_t
    neg_sum_t = vsum_t - ssum_t

    # ---- single lane-packed accumulator update (2 VMEM ld/st per step) ----
    lane8 = jax.lax.broadcasted_iota(jnp.int32, (tm, 8), 1)
    upd = (jnp.where(lane8 == 0, cnt_gt_t, zero)
           + jnp.where(lane8 == 1, ploss_t, zero)
           + jnp.where(lane8 == 2, nloss_t, zero)
           + jnp.where(lane8 == 3, pos_sum_t, zero)
           + jnp.where(lane8 == 4, pos_cnt_t, zero)
           + jnp.where(lane8 == 5, neg_sum_t, zero)
           + jnp.where(lane8 == 6, neg_cnt_t, zero))
    acc_ref[...] += upd

    # ---- finalize this row stripe: 6 partial scalars into lanes 0..5, sublane 0 ----
    @pl.when(j == nj - 1)
    def _final():
        acc = acc_ref[...]                                             # (tm, 8)
        rvalid = jnp.where(row_idx < n_actual, one, zero)              # (tm, 1)
        cnt_gt = acc[:, 0:1]
        keep = rvalid * jnp.where(cnt_gt >= 2.0, one, zero)
        loss_p = jnp.sum(keep * (acc[:, 1:2] + acc[:, 2:3]))
        c_p = jnp.sum(rvalid * jnp.where(cnt_gt < 2.0, one, zero))
        ps = jnp.sum(rvalid * acc[:, 3:4])
        pc = jnp.sum(rvalid * acc[:, 4:5])
        ns = jnp.sum(rvalid * acc[:, 5:6])
        nc = jnp.sum(rvalid * acc[:, 6:7])
        lane = jax.lax.broadcasted_iota(jnp.int32, (OUT_SUB, OUT_LANES), 1)
        sub = jax.lax.broadcasted_iota(jnp.int32, (OUT_SUB, OUT_LANES), 0)
        res = (jnp.where(lane == 0, loss_p, zero)
               + jnp.where(lane == 1, c_p, zero)
               + jnp.where(lane == 2, ps, zero)
               + jnp.where(lane == 3, pc, zero)
               + jnp.where(lane == 4, ns, zero)
               + jnp.where(lane == 5, nc, zero))
        out_ref[...] = jnp.where(sub == 0, res, zero)


def contrastive_loss(inputs, targets, margin=MARGIN, tm=512, tn=256,
                     mxu_dtype=jnp.bfloat16):
    """inputs: (N, D) float, targets: (N,) int labels. Returns (loss, prec, pos_d, neg_d).

    mxu_dtype=jnp.bfloat16 feeds the MXU its native operand type (~3-6x faster,
    sim error ~1e-3); pass jnp.float32 for exact PyTorch-reference semantics.
    """
    n, d = inputs.shape
    d_pad = _round_up(max(d, 128), 128)            # lane-align the feature axis
    tm_e, tn_e, n_pad = _choose_tiles(n, tm, tn)
    x_bytes = jnp.dtype(mxu_dtype).itemsize

    # v7x has only 64 MiB VMEM per TC: shrink tm until the footprint fits ~40 MiB.
    budget = 40 << 20
    while _footprint_bytes(tm_e, tn_e, d_pad, x_bytes) > budget and tm_e > SUB:
        new_tm = _largest_tile(n_pad, tm_e // 2)
        if new_tm == tm_e:
            break
        tm_e = new_tm
    fp = _footprint_bytes(tm_e, tn_e, d_pad, x_bytes)
    vmem_limit = int(min(max(fp * 1.25 + (8 << 20), 16 << 20), 56 << 20))

    # ---- hoisted L2 normalization (once, outside the grid loop) + MXU cast ----
    x = jnp.asarray(inputs, jnp.float32)
    ss = jnp.sum(x * x, axis=1, keepdims=True)
    xn = x * jax.lax.rsqrt(jnp.maximum(ss, 1e-30))          # zero rows stay zero
    xn = jnp.pad(xn, ((0, n_pad - n), (0, d_pad - d))).astype(mxu_dtype)
    lab = jnp.pad(jnp.asarray(targets, jnp.int32), (0, n_pad - n), constant_values=-1)
    row_lab = lab.reshape(n_pad, 1)
    col_lab = lab.reshape(1, n_pad)

    n_row_tiles = n_pad // tm_e
    n_col_tiles = n_pad // tn_e

    kernel = functools.partial(_contrastive_kernel, margin=float(margin),
                               n_actual=n, tm=tm_e, tn=tn_e)

    grid_spec = pltpu.PrefetchScalarGridSpec(
        num_scalar_prefetch=0,
        grid=(n_row_tiles, n_col_tiles),
        in_specs=[
            pl.BlockSpec((tm_e, d_pad), lambda i, j: (i, 0)),   # x row tile (resident over j)
            pl.BlockSpec((tn_e, d_pad), lambda i, j: (j, 0)),   # x column tile (streamed)
            pl.BlockSpec((tm_e, 1), lambda i, j: (i, 0)),       # row labels (column vector)
            pl.BlockSpec((1, tn_e), lambda i, j: (0, j)),       # column labels (row vector)
        ],
        out_specs=pl.BlockSpec((OUT_SUB, OUT_LANES), lambda i, j: (i, 0)),
        scratch_shapes=[
            pltpu.VMEM((tm_e, 8), jnp.float32),   # lane-packed per-row accumulators
        ],
    )

    out = pl.pallas_call(
        kernel,
        out_shape=jax.ShapeDtypeStruct((n_row_tiles * OUT_SUB, OUT_LANES), jnp.float32),
        grid_spec=grid_spec,
        compiler_params=pltpu.CompilerParams(
            dimension_semantics=("parallel", "arbitrary"),
            vmem_limit_bytes=vmem_limit,
        ),
    )(xn, xn, row_lab, col_lab)

    # non-written sublanes are zero; f32 is plenty for the stripe-count sum here
    totals = jnp.sum(out, axis=0)
    loss = totals[0] / n
    prec = totals[1] / n
    pos_d = jnp.where(totals[3] > 0, totals[2] / jnp.maximum(totals[3], 1.0), 0.0)
    neg_d = jnp.where(totals[5] > 0, totals[4] / jnp.maximum(totals[5], 1.0), 0.0)
    return loss, prec, pos_d, neg_d


def _reference(inputs, targets, margin=MARGIN):
    """Faithful numpy re-implementation of the PyTorch forward (for verification)."""
    x = np.asarray(inputs, np.float32)
    t = np.asarray(targets)
    x = x / np.linalg.norm(x, axis=1, keepdims=True)
    n = x.shape[0]
    sim = x @ x.T
    pos_mask = t[:, None] == t[None, :]
    eye = np.eye(n, dtype=bool)
    neg_mask = ~pos_mask
    pos_mask_nd = pos_mask & ~eye
    pos_sim = sim[pos_mask_nd]
    neg_sim = sim[neg_mask]
    num_instances = len(pos_sim) // n + 1
    num_neg = n - num_instances
    pos_sim = pos_sim.reshape(-1, num_instances - 1)
    neg_sim = neg_sim.reshape(-1, num_neg)
    loss = 0.0
    c = 0
    for i in range(n):
        neg_pair = np.sort(neg_sim[i])
        pp = neg_pair[neg_pair < margin + 0.05]
        npair = neg_pair[neg_pair > margin - 0.05]
        if len(npair) < 2:
            c += 1
            continue
        pos_loss = float(np.sum(margin + 0.05 - pp)) if len(pp) else 0.0
        neg_loss = float(np.sum(npair - margin + 0.05)) if len(npair) else 0.0
        loss = loss + pos_loss + neg_loss
    return loss / n, float(c) / n, float(pos_sim.mean()), float(neg_sim.mean())


if __name__ == "__main__":
    key = jax.random.PRNGKey(0)
    n, d = 8, 32  # 4 classes x 2 instances each
    k1, _ = jax.random.split(key)
    # shift features so similarities span the margin band (exercises both branches)
    inputs = jax.random.normal(k1, (n, d), dtype=jnp.float32) + 0.7
    targets = jnp.array([0, 0, 1, 1, 2, 2, 3, 3], dtype=jnp.int32)

    ref = _reference(np.asarray(inputs), np.asarray(targets))

    # Exact-semantics path (f32 MXU operands): tight check vs the PyTorch reference.
    got_f32 = contrastive_loss(inputs, targets, mxu_dtype=jnp.float32)
    jax.block_until_ready(got_f32)
    np.testing.assert_allclose([float(v) for v in got_f32], ref, rtol=1e-4, atol=1e-5)

    # Fast path (bf16 MXU operands, f32 accumulation): loose check (~1e-3 sim error).
    got_bf16 = contrastive_loss(inputs, targets)   # default mxu_dtype=bfloat16
    jax.block_until_ready(got_bf16)
    g = [float(v) for v in got_bf16]
    assert all(np.isfinite(v) for v in g)
    np.testing.assert_allclose([g[0], g[2], g[3]], [ref[0], ref[2], ref[3]],
                               rtol=0.1, atol=0.1)

    print("KERNEL_OK")
</pallas_src>

<mosaic_0001>
module attributes {stable_mosaic.version = 11 : i64} {
  func.func @_contrastive_kernel(%arg0: i32, %arg1: i32, %arg2: memref<16x128xf32, #tpu.memory_space<vmem>>, %arg3: memref<16x128xf32, #tpu.memory_space<vmem>>, %arg4: memref<16x1xi32, #tpu.memory_space<vmem>>, %arg5: memref<1x16xi32, #tpu.memory_space<vmem>>, %arg6: memref<8x128xf32, #tpu.memory_space<vmem>>, %arg7: memref<16x8xf32, #tpu.memory_space<vmem>>) attributes {dimension_semantics = [#tpu.dimension_semantics<parallel>, #tpu.dimension_semantics<arbitrary>], iteration_bounds = array<i64: 1, 1>, scalar_prefetch = 0 : i64, scratch_operands = 1 : i64, tpu.core_type = #tpu.core_type<tc>, window_params = [{transform_indices = @transform_0, window_bounds = array<i64: 16, 128>}, {transform_indices = @transform_1, window_bounds = array<i64: 16, 128>}, {transform_indices = @transform_2, window_bounds = array<i64: 16, 1>}, {transform_indices = @transform_3, window_bounds = array<i64: 1, 16>}, {transform_indices = @transform_4, window_bounds = array<i64: 8, 128>}]} {
    %c0_i32 = arith.constant 0 : i32
    %0 = arith.cmpi eq, %arg1, %c0_i32 : i32
    %1 = arith.extui %0 : i1 to i32
    %c0_i32_0 = arith.constant 0 : i32
    %2 = arith.cmpi ne, %1, %c0_i32_0 : i32
    scf.if %2 {
      %cst_52 = arith.constant 0.000000e+00 : f32
      %141 = vector.broadcast %cst_52 : f32 to vector<16x8xf32>
      %c0_53 = arith.constant 0 : index
      %c0_54 = arith.constant 0 : index
      %142 = vector.load %arg7[%c0_53, %c0_54] : memref<16x8xf32, #tpu.memory_space<vmem>>, vector<16x8xf32>
      tpu.vector_store %arg7[%c0_53, %c0_54], %141 {strides = array<i32>} : memref<16x8xf32, #tpu.memory_space<vmem>>, vector<16x8xf32>,
    } else {
    }
    %c0 = arith.constant 0 : index
    %c0_1 = arith.constant 0 : index
    %3 = vector.load %arg2[%c0, %c0_1] : memref<16x128xf32, #tpu.memory_space<vmem>>, vector<16x128xf32>
    %c0_2 = arith.constant 0 : index
    %c0_3 = arith.constant 0 : index
    %4 = vector.load %arg3[%c0_2, %c0_3] : memref<16x128xf32, #tpu.memory_space<vmem>>, vector<16x128xf32>
    %cst = arith.constant dense<0.000000e+00> : vector<16x16xf32>
    %5 = tpu.matmul %3, %4, %cst {dimension_numbers = #tpu.dot_dimension_numbers<[1], [1], [0], [0], [0, 0, 1, 0], [], []>} : vector<16x128xf32>, vector<16x128xf32>, vector<16x16xf32> -> vector<16x16xf32>
    %c16_i32 = arith.constant 16 : i32
    %6 = arith.muli %arg0, %c16_i32 : i32
    %7 = tpu.iota {dimensions = array<i32: 0>} : vector<16x1xi32>
    %8 = vector.broadcast %6 : i32 to vector<16x1xi32>
    %9 = arith.addi %8, %7 : vector<16x1xi32>
    %c16_i32_4 = arith.constant 16 : i32
    %10 = arith.muli %arg1, %c16_i32_4 : i32
    %11 = tpu.iota {dimensions = array<i32: 1>} : vector<1x16xi32>
    %12 = vector.broadcast %10 : i32 to vector<1x16xi32>
    %13 = arith.addi %12, %11 : vector<1x16xi32>
    %c8_i32 = arith.constant 8 : i32
    %14 = vector.broadcast %c8_i32 : i32 to vector<1x16xi32>
    %15 = arith.cmpi slt, %13, %14 : vector<1x16xi32>
    %cst_5 = arith.constant 1.000000e+00 : f32
    %cst_6 = arith.constant 0.000000e+00 : f32
    %16 = vector.broadcast %cst_5 : f32 to vector<1x16xf32>
    %17 = vector.broadcast %cst_6 : f32 to vector<1x16xf32>
    %18 = arith.select %15, %16, %17 : vector<1x16xi1>, vector<1x16xf32>
    %c0_7 = arith.constant 0 : index
    %c0_8 = arith.constant 0 : index
    %19 = vector.load %arg4[%c0_7, %c0_8] : memref<16x1xi32, #tpu.memory_space<vmem>>, vector<16x1xi32>
    %c0_9 = arith.constant 0 : index
    %c0_10 = arith.constant 0 : index
    %20 = vector.load %arg5[%c0_9, %c0_10] : memref<1x16xi32, #tpu.memory_space<vmem>>, vector<1x16xi32>
    %21 = vector.broadcast %19 : vector<16x1xi32> to vector<16x16xi32>
    %22 = vector.broadcast %20 : vector<1x16xi32> to vector<16x16xi32>
    %23 = arith.cmpi eq, %21, %22 : vector<16x16xi32>
    %cst_11 = arith.constant 1.000000e+00 : f32
    %cst_12 = arith.constant 0.000000e+00 : f32
    %24 = vector.broadcast %cst_11 : f32 to vector<16x16xf32>
    %25 = vector.broadcast %cst_12 : f32 to vector<16x16xf32>
    %26 = arith.select %23, %24, %25 : vector<16x16xi1>, vector<16x16xf32>
    %27 = vector.broadcast %18 : vector<1x16xf32> to vector<16x16xf32>
    %28 = arith.mulf %26, %27 : vector<16x16xf32>
    %29 = vector.broadcast %18 : vector<1x16xf32> to vector<16x16xf32>
    %30 = arith.subf %29, %28 : vector<16x16xf32>
    %c16_i32_13 = arith.constant 16 : i32
    %31 = arith.muli %arg1, %c16_i32_13 : i32
    %32 = vector.broadcast %31 : i32 to vector<16x1xi32>
    %33 = arith.cmpi sge, %9, %32 : vector<16x1xi32>
    %c16_i32_14 = arith.constant 16 : i32
    %34 = arith.muli %arg1, %c16_i32_14 : i32
    %c16_i32_15 = arith.constant 16 : i32
    %35 = arith.addi %34, %c16_i32_15 : i32
    %36 = vector.broadcast %35 : i32 to vector<16x1xi32>
    %37 = arith.cmpi slt, %9, %36 : vector<16x1xi32>
    %38 = arith.andi %33, %37 : vector<16x1xi1>
    %c8_i32_16 = arith.constant 8 : i32
    %39 = vector.broadcast %c8_i32_16 : i32 to vector<16x1xi32>
    %40 = arith.cmpi slt, %9, %39 : vector<16x1xi32>
    %41 = arith.andi %38, %40 : vector<16x1xi1>
    %cst_17 = arith.constant 1.000000e+00 : f32
    %cst_18 = arith.constant 0.000000e+00 : f32
    %42 = vector.broadcast %cst_17 : f32 to vector<16x1xf32>
    %43 = vector.broadcast %cst_18 : f32 to vector<16x1xf32>
    %44 = arith.select %41, %42, %43 : vector<16x1xi1>, vector<16x1xf32>
    %c16_i32_19 = arith.constant 16 : i32
    %45 = arith.muli %arg1, %c16_i32_19 : i32
    %c8_i32_20 = arith.constant 8 : i32
    %46 = arith.subi %c8_i32_20, %45 : i32
    %c0_i32_21 = arith.constant 0 : i32
    %c16_i32_22 = arith.constant 16 : i32
    %47 = arith.maxsi %c0_i32_21, %46 : i32
    %48 = arith.minsi %c16_i32_22, %47 : i32
    %49 = arith.sitofp %48 : i32 to f32
    %cst_23 = arith.constant 4.500000e-01 : f32
    %50 = vector.broadcast %cst_23 : f32 to vector<16x16xf32>
    %51 = arith.subf %5, %50 : vector<16x16xf32>
    %cst_24 = arith.constant 5.500000e-01 : f32
    %52 = vector.broadcast %cst_24 : f32 to vector<16x16xf32>
    %53 = arith.subf %52, %5 : vector<16x16xf32>
    %cst_25 = arith.constant 0.000000e+00 : f32
    %54 = vector.broadcast %cst_25 : f32 to vector<16x16xf32>
    %55 = arith.cmpf ogt, %51, %54 : vector<16x16xf32>
    %cst_26 = arith.constant 1.000000e+00 : f32
    %cst_27 = arith.constant 0.000000e+00 : f32
    %56 = vector.broadcast %cst_26 : f32 to vector<16x16xf32>
    %57 = vector.broadcast %cst_27 : f32 to vector<16x16xf32>
    %58 = arith.select %55, %56, %57 : vector<16x16xi1>, vector<16x16xf32>
    %59 = arith.mulf %30, %58 : vector<16x16xf32>
    %cst_28 = arith.constant dense<0.000000e+00> : vector<16xf32>
    %60 = vector.multi_reduction <add>, %59, %cst_28 [1] : vector<16x16xf32> to vector<16xf32>
    %61 = vector.shape_cast %60 : vector<16xf32> to vector<16x1xf32>
    %cst_29 = arith.constant 0.000000e+00 : f32
    %62 = vector.broadcast %cst_29 : f32 to vector<16x16xf32>
    %63 = arith.maximumf %51, %62 : vector<16x16xf32>
    %64 = arith.mulf %30, %63 : vector<16x16xf32>
    %cst_30 = arith.constant dense<0.000000e+00> : vector<16xf32>
    %65 = vector.multi_reduction <add>, %64, %cst_30 [1] : vector<16x16xf32> to vector<16xf32>
    %66 = vector.shape_cast %65 : vector<16xf32> to vector<16x1xf32>
    %cst_31 = arith.constant 0.000000e+00 : f32
    %67 = vector.broadcast %cst_31 : f32 to vector<16x16xf32>
    %68 = arith.maximumf %53, %67 : vector<16x16xf32>
    %69 = arith.mulf %30, %68 : vector<16x16xf32>
    %cst_32 = arith.constant dense<0.000000e+00> : vector<16xf32>
    %70 = vector.multi_reduction <add>, %69, %cst_32 [1] : vector<16x16xf32> to vector<16xf32>
    %71 = vector.shape_cast %70 : vector<16xf32> to vector<16x1xf32>
    %cst_33 = arith.constant dense<0.000000e+00> : vector<16xf32>
    %72 = vector.multi_reduction <add>, %28, %cst_33 [1] : vector<16x16xf32> to vector<16xf32>
    %73 = vector.shape_cast %72 : vector<16xf32> to vector<16x1xf32>
    %74 = arith.mulf %5, %28 : vector<16x16xf32>
    %cst_34 = arith.constant dense<0.000000e+00> : vector<16xf32>
    %75 = vector.multi_reduction <add>, %74, %cst_34 [1] : vector<16x16xf32> to vector<16xf32>
    %76 = vector.shape_cast %75 : vector<16xf32> to vector<16x1xf32>
    %77 = vector.broadcast %18 : vector<1x16xf32> to vector<16x16xf32>
    %78 = arith.mulf %5, %77 : vector<16x16xf32>
    %cst_35 = arith.constant dense<0.000000e+00> : vector<16xf32>
    %79 = vector.multi_reduction <add>, %78, %cst_35 [1] : vector<16x16xf32> to vector<16xf32>
    %80 = vector.shape_cast %79 : vector<16xf32> to vector<16x1xf32>
    %81 = arith.subf %73, %44 : vector<16x1xf32>
    %82 = arith.subf %76, %44 : vector<16x1xf32>
    %83 = vector.broadcast %49 : f32 to vector<16x1xf32>
    %84 = arith.subf %83, %73 : vector<16x1xf32>
    %85 = arith.subf %80, %76 : vector<16x1xf32>
    %86 = tpu.iota {dimensions = array<i32: 1>} : vector<16x8xi32>
    %c0_i32_36 = arith.constant 0 : i32
    %87 = vector.broadcast %c0_i32_36 : i32 to vector<16x8xi32>
    %88 = arith.cmpi eq, %86, %87 : vector<16x8xi32>
    %cst_37 = arith.constant 0.000000e+00 : f32
    %89 = vector.shape_cast %61 : vector<16x1xf32> to vector<16x1xf32>
    %90 = vector.broadcast %89 : vector<16x1xf32> to vector<16x8xf32>
    %91 = vector.broadcast %cst_37 : f32 to vector<16x8xf32>
    %92 = arith.select %88, %90, %91 : vector<16x8xi1>, vector<16x8xf32>
    %c1_i32 = arith.constant 1 : i32
    %93 = vector.broadcast %c1_i32 : i32 to vector<16x8xi32>
    %94 = arith.cmpi eq, %86, %93 : vector<16x8xi32>
    %cst_38 = arith.constant 0.000000e+00 : f32
    %95 = vector.shape_cast %71 : vector<16x1xf32> to vector<16x1xf32>
    %96 = vector.broadcast %95 : vector<16x1xf32> to vector<16x8xf32>
    %97 = vector.broadcast %cst_38 : f32 to vector<16x8xf32>
    %98 = arith.select %94, %96, %97 : vector<16x8xi1>, vector<16x8xf32>
    %99 = arith.addf %92, %98 : vector<16x8xf32>
    %c2_i32 = arith.constant 2 : i32
    %100 = vector.broadcast %c2_i32 : i32 to vector<16x8xi32>
    %101 = arith.cmpi eq, %86, %100 : vector<16x8xi32>
    %cst_39 = arith.constant 0.000000e+00 : f32
    %102 = vector.shape_cast %66 : vector<16x1xf32> to vector<16x1xf32>
    %103 = vector.broadcast %102 : vector<16x1xf32> to vector<16x8xf32>
    %104 = vector.broadcast %cst_39 : f32 to vector<16x8xf32>
    %105 = arith.select %101, %103, %104 : vector<16x8xi1>, vector<16x8xf32>
    %106 = arith.addf %99, %105 : vector<16x8xf32>
    %c3_i32 = arith.constant 3 : i32
    %107 = vector.broadcast %c3_i32 : i32 to vector<16x8xi32>
    %108 = arith.cmpi eq, %86, %107 : vector<16x8xi32>
    %cst_40 = arith.constant 0.000000e+00 : f32
    %109 = vector.shape_cast %82 : vector<16x1xf32> to vector<16x1xf32>
    %110 = vector.broadcast %109 : vector<16x1xf32> to vector<16x8xf32>
    %111 = vector.broadcast %cst_40 : f32 to vector<16x8xf32>
    %112 = arith.select %108, %110, %111 : vector<16x8xi1>, vector<16x8xf32>
    %113 = arith.addf %106, %112 : vector<16x8xf32>
    %c4_i32 = arith.constant 4 : i32
    %114 = vector.broadcast %c4_i32 : i32 to vector<16x8xi32>
    %115 = arith.cmpi eq, %86, %114 : vector<16x8xi32>
    %cst_41 = arith.constant 0.000000e+00 : f32
    %116 = vector.shape_cast %81 : vector<16x1xf32> to vector<16x1xf32>
    %117 = vector.broadcast %116 : vector<16x1xf32> to vector<16x8xf32>
    %118 = vector.broadcast %cst_41 : f32 to vector<16x8xf32>
    %119 = arith.select %115, %117, %118 : vector<16x8xi1>, vector<16x8xf32>
    %120 = arith.addf %113, %119 : vector<16x8xf32>
    %c5_i32 = arith.constant 5 : i32
    %121 = vector.broadcast %c5_i32 : i32 to vector<16x8xi32>
    %122 = arith.cmpi eq, %86, %121 : vector<16x8xi32>
    %cst_42 = arith.constant 0.000000e+00 : f32
    %123 = vector.shape_cast %85 : vector<16x1xf32> to vector<16x1xf32>
    %124 = vector.broadcast %123 : vector<16x1xf32> to vector<16x8xf32>
    %125 = vector.broadcast %cst_42 : f32 to vector<16x8xf32>
    %126 = arith.select %122, %124, %125 : vector<16x8xi1>, vector<16x8xf32>
    %127 = arith.addf %120, %126 : vector<16x8xf32>
    %c6_i32 = arith.constant 6 : i32
    %128 = vector.broadcast %c6_i32 : i32 to vector<16x8xi32>
    %129 = arith.cmpi eq, %86, %128 : vector<16x8xi32>
    %cst_43 = arith.constant 0.000000e+00 : f32
    %130 = vector.shape_cast %84 : vector<16x1xf32> to vector<16x1xf32>
    %131 = vector.broadcast %130 : vector<16x1xf32> to vector<16x8xf32>
    %132 = vector.broadcast %cst_43 : f32 to vector<16x8xf32>
    %133 = arith.select %129, %131, %132 : vector<16x8xi1>, vector<16x8xf32>
    %134 = arith.addf %127, %133 : vector<16x8xf32>
    %c0_44 = arith.constant 0 : index
    %c0_45 = arith.constant 0 : index
    %135 = vector.load %arg7[%c0_44, %c0_45] : memref<16x8xf32, #tpu.memory_space<vmem>>, vector<16x8xf32>
    %136 = arith.addf %135, %134 : vector<16x8xf32>
    %c0_46 = arith.constant 0 : index
    %c0_47 = arith.constant 0 : index
    %137 = vector.load %arg7[%c0_46, %c0_47] : memref<16x8xf32, #tpu.memory_space<vmem>>, vector<16x8xf32>
    tpu.vector_store %arg7[%c0_46, %c0_47], %136 {strides = array<i32>} : memref<16x8xf32, #tpu.memory_space<vmem>>, vector<16x8xf32>,
    %c0_i32_48 = arith.constant 0 : i32
    %138 = arith.cmpi eq, %arg1, %c0_i32_48 : i32
    %139 = arith.extui %138 : i1 to i32
    %cst_49 = arith.constant 1.000000e+00 : f32
    %cst_50 = arith.constant 0.000000e+00 : f32
    %c0_i32_51 = arith.constant 0 : i32
    %140 = arith.cmpi ne, %139, %c0_i32_51 : i32
    scf.if %140 {
      %c0_52 = arith.constant 0 : index
      %c0_53 = arith.constant 0 : index
      %141 = vector.load %arg7[%c0_52, %c0_53] : memref<16x8xf32, #tpu.memory_space<vmem>>, vector<16x8xf32>
      %c8_i32_54 = arith.constant 8 : i32
      %142 = vector.broadcast %c8_i32_54 : i32 to vector<16x1xi32>
      %143 = arith.cmpi slt, %9, %142 : vector<16x1xi32>
      %144 = vector.broadcast %cst_49 : f32 to vector<16x1xf32>
      %145 = vector.broadcast %cst_50 : f32 to vector<16x1xf32>
      %146 = arith.select %143, %144, %145 : vector<16x1xi1>, vector<16x1xf32>
      %147 = vector.extract_strided_slice %141 {offsets = [0, 0], sizes = [16, 1], strides = [1, 1]} : vector<16x8xf32> to vector<16x1xf32>
      %cst_55 = arith.constant 2.000000e+00 : f32
      %148 = vector.broadcast %cst_55 : f32 to vector<16x1xf32>
      %149 = arith.cmpf oge, %147, %148 : vector<16x1xf32>
      %150 = vector.broadcast %cst_49 : f32 to vector<16x1xf32>
      %151 = vector.broadcast %cst_50 : f32 to vector<16x1xf32>
      %152 = arith.select %149, %150, %151 : vector<16x1xi1>, vector<16x1xf32>
      %153 = arith.mulf %146, %152 : vector<16x1xf32>
      %154 = vector.extract_strided_slice %141 {offsets = [0, 1], sizes = [16, 1], strides = [1, 1]} : vector<16x8xf32> to vector<16x1xf32>
      %155 = vector.extract_strided_slice %141 {offsets = [0, 2], sizes = [16, 1], strides = [1, 1]} : vector<16x8xf32> to vector<16x1xf32>
      %156 = arith.addf %154, %155 : vector<16x1xf32>
      %157 = arith.mulf %153, %156 : vector<16x1xf32>
      %158 = vector.shape_cast %157 : vector<16x1xf32> to vector<1x16x1xf32>
      %cst_56 = arith.constant dense<0.000000e+00> : vector<1xf32>
      %159 = vector.multi_reduction <add>, %158, %cst_56 [1, 2] : vector<1x16x1xf32> to vector<1xf32>
      %160 = vector.shape_cast %159 : vector<1xf32> to vector<1x1x1xf32>
      %161 = vector.extract %160[0, 0, 0] : f32 from vector<1x1x1xf32>
      %cst_57 = arith.constant 2.000000e+00 : f32
      %162 = vector.broadcast %cst_57 : f32 to vector<16x1xf32>
      %163 = arith.cmpf olt, %147, %162 : vector<16x1xf32>
      %164 = vector.broadcast %cst_49 : f32 to vector<16x1xf32>
      %165 = vector.broadcast %cst_50 : f32 to vector<16x1xf32>
      %166 = arith.select %163, %164, %165 : vector<16x1xi1>, vector<16x1xf32>
      %167 = arith.mulf %146, %166 : vector<16x1xf32>
      %168 = vector.shape_cast %167 : vector<16x1xf32> to vector<1x16x1xf32>
      %cst_58 = arith.constant dense<0.000000e+00> : vector<1xf32>
      %169 = vector.multi_reduction <add>, %168, %cst_58 [1, 2] : vector<1x16x1xf32> to vector<1xf32>
      %170 = vector.shape_cast %169 : vector<1xf32> to vector<1x1x1xf32>
      %171 = vector.extract %170[0, 0, 0] : f32 from vector<1x1x1xf32>
      %172 = vector.extract_strided_slice %141 {offsets = [0, 3], sizes = [16, 1], strides = [1, 1]} : vector<16x8xf32> to vector<16x1xf32>
      %173 = arith.mulf %146, %172 : vector<16x1xf32>
      %174 = vector.shape_cast %173 : vector<16x1xf32> to vector<1x16x1xf32>
      %cst_59 = arith.constant dense<0.000000e+00> : vector<1xf32>
      %175 = vector.multi_reduction <add>, %174, %cst_59 [1, 2] : vector<1x16x1xf32> to vector<1xf32>
      %176 = vector.shape_cast %175 : vector<1xf32> to vector<1x1x1xf32>
      %177 = vector.extract %176[0, 0, 0] : f32 from vector<1x1x1xf32>
      %178 = vector.extract_strided_slice %141 {offsets = [0, 4], sizes = [16, 1], strides = [1, 1]} : vector<16x8xf32> to vector<16x1xf32>
      %179 = arith.mulf %146, %178 : vector<16x1xf32>
      %180 = vector.shape_cast %179 : vector<16x1xf32> to vector<1x16x1xf32>
      %cst_60 = arith.constant dense<0.000000e+00> : vector<1xf32>
      %181 = vector.multi_reduction <add>, %180, %cst_60 [1, 2] : vector<1x16x1xf32> to vector<1xf32>
      %182 = vector.shape_cast %181 : vector<1xf32> to vector<1x1x1xf32>
      %183 = vector.extract %182[0, 0, 0] : f32 from vector<1x1x1xf32>
      %184 = vector.extract_strided_slice %141 {offsets = [0, 5], sizes = [16, 1], strides = [1, 1]} : vector<16x8xf32> to vector<16x1xf32>
      %185 = arith.mulf %146, %184 : vector<16x1xf32>
      %186 = vector.shape_cast %185 : vector<16x1xf32> to vector<1x16x1xf32>
      %cst_61 = arith.constant dense<0.000000e+00> : vector<1xf32>
      %187 = vector.multi_reduction <add>, %186, %cst_61 [1, 2] : vector<1x16x1xf32> to vector<1xf32>
      %188 = vector.shape_cast %187 : vector<1xf32> to vector<1x1x1xf32>
      %189 = vector.extract %188[0, 0, 0] : f32 from vector<1x1x1xf32>
      %190 = vector.extract_strided_slice %141 {offsets = [0, 6], sizes = [16, 1], strides = [1, 1]} : vector<16x8xf32> to vector<16x1xf32>
      %191 = arith.mulf %146, %190 : vector<16x1xf32>
      %192 = vector.shape_cast %191 : vector<16x1xf32> to vector<1x16x1xf32>
      %cst_62 = arith.constant dense<0.000000e+00> : vector<1xf32>
      %193 = vector.multi_reduction <add>, %192, %cst_62 [1, 2] : vector<1x16x1xf32> to vector<1xf32>
      %194 = vector.shape_cast %193 : vector<1xf32> to vector<1x1x1xf32>
      %195 = vector.extract %194[0, 0, 0] : f32 from vector<1x1x1xf32>
      %196 = tpu.iota {dimensions = array<i32: 1>} : vector<8x128xi32>
      %197 = tpu.iota {dimensions = array<i32: 0>} : vector<8x128xi32>
      %c0_i32_63 = arith.constant 0 : i32
      %198 = vector.broadcast %c0_i32_63 : i32 to vector<8x128xi32>
      %199 = arith.cmpi eq, %196, %198 : vector<8x128xi32>
      %200 = vector.broadcast %161 : f32 to vector<8x128xf32>
      %201 = vector.broadcast %cst_50 : f32 to vector<8x128xf32>
      %202 = arith.select %199, %200, %201 : vector<8x128xi1>, vector<8x128xf32>
      %c1_i32_64 = arith.constant 1 : i32
      %203 = vector.broadcast %c1_i32_64 : i32 to vector<8x128xi32>
      %204 = arith.cmpi eq, %196, %203 : vector<8x128xi32>
      %205 = vector.broadcast %171 : f32 to vector<8x128xf32>
      %206 = vector.broadcast %cst_50 : f32 to vector<8x128xf32>
      %207 = arith.select %204, %205, %206 : vector<8x128xi1>, vector<8x128xf32>
      %208 = arith.addf %202, %207 : vector<8x128xf32>
      %c2_i32_65 = arith.constant 2 : i32
      %209 = vector.broadcast %c2_i32_65 : i32 to vector<8x128xi32>
      %210 = arith.cmpi eq, %196, %209 : vector<8x128xi32>
      %211 = vector.broadcast %177 : f32 to vector<8x128xf32>
      %212 = vector.broadcast %cst_50 : f32 to vector<8x128xf32>
      %213 = arith.select %210, %211, %212 : vector<8x128xi1>, vector<8x128xf32>
      %214 = arith.addf %208, %213 : vector<8x128xf32>
      %c3_i32_66 = arith.constant 3 : i32
      %215 = vector.broadcast %c3_i32_66 : i32 to vector<8x128xi32>
      %216 = arith.cmpi eq, %196, %215 : vector<8x128xi32>
      %217 = vector.broadcast %183 : f32 to vector<8x128xf32>
      %218 = vector.broadcast %cst_50 : f32 to vector<8x128xf32>
      %219 = arith.select %216, %217, %218 : vector<8x128xi1>, vector<8x128xf32>
      %220 = arith.addf %214, %219 : vector<8x128xf32>
      %c4_i32_67 = arith.constant 4 : i32
      %221 = vector.broadcast %c4_i32_67 : i32 to vector<8x128xi32>
      %222 = arith.cmpi eq, %196, %221 : vector<8x128xi32>
      %223 = vector.broadcast %189 : f32 to vector<8x128xf32>
      %224 = vector.broadcast %cst_50 : f32 to vector<8x128xf32>
      %225 = arith.select %222, %223, %224 : vector<8x128xi1>, vector<8x128xf32>
      %226 = arith.addf %220, %225 : vector<8x128xf32>
      %c5_i32_68 = arith.constant 5 : i32
      %227 = vector.broadcast %c5_i32_68 : i32 to vector<8x128xi32>
      %228 = arith.cmpi eq, %196, %227 : vector<8x128xi32>
      %229 = vector.broadcast %195 : f32 to vector<8x128xf32>
      %230 = vector.broadcast %cst_50 : f32 to vector<8x128xf32>
      %231 = arith.select %228, %229, %230 : vector<8x128xi1>, vector<8x128xf32>
      %232 = arith.addf %226, %231 : vector<8x128xf32>
      %c0_i32_69 = arith.constant 0 : i32
      %233 = vector.broadcast %c0_i32_69 : i32 to vector<8x128xi32>
      %234 = arith.cmpi eq, %197, %233 : vector<8x128xi32>
      %235 = vector.broadcast %cst_50 : f32 to vector<8x128xf32>
      %236 = arith.select %234, %232, %235 : vector<8x128xi1>, vector<8x128xf32>
      %c0_70 = arith.constant 0 : index
      %c0_71 = arith.constant 0 : index
      %237 = vector.load %arg6[%c0_70, %c0_71] : memref<8x128xf32, #tpu.memory_space<vmem>>, vector<8x128xf32>
      tpu.vector_store %arg6[%c0_70, %c0_71], %236 {strides = array<i32>} : memref<8x128xf32, #tpu.memory_space<vmem>>, vector<8x128xf32>,
    } else {
    }
    return
  }
  func.func @transform_0(%arg0: i32, %arg1: i32) -> (i32, i32) {
    %c0_i32 = arith.constant 0 : i32
    %c0_i32_0 = arith.constant 0 : i32
    return %arg0, %c0_i32 : i32, i32
  }
  func.func @transform_1(%arg0: i32, %arg1: i32) -> (i32, i32) {
    %c0_i32 = arith.constant 0 : i32
    %c0_i32_0 = arith.constant 0 : i32
    return %arg1, %c0_i32 : i32, i32
  }
  func.func @transform_2(%arg0: i32, %arg1: i32) -> (i32, i32) {
    %c0_i32 = arith.constant 0 : i32
    %c0_i32_0 = arith.constant 0 : i32
    return %arg0, %c0_i32 : i32, i32
  }
  func.func @transform_3(%arg0: i32, %arg1: i32) -> (i32, i32) {
    %c0_i32 = arith.constant 0 : i32
    %c0_i32_0 = arith.constant 0 : i32
    return %c0_i32, %arg1 : i32, i32
  }
  func.func @transform_4(%arg0: i32, %arg1: i32) -> (i32, i32) {
    %c0_i32 = arith.constant 0 : i32
    %c0_i32_0 = arith.constant 0 : i32
    return %arg0, %c0_i32 : i32, i32
  }
}

</mosaic_0001>

<bundles_post_ra>
// kernel: tpu_custom_call.1
= control target key start
LH: loop header
LB: loop body
LE: loop exit
PB: predicated region body
PF: predicated region fallthrough
CT: control target
= control target key end

     0   :  { %9 = vsyncpa [#allocation4], 0  ;;  %s714_s0 = inlined_call_operand.vmem [shape: f32[16,128], index: 0, kind: input, shape index: {}]   ;;  %s715_s1 = inlined_call_operand.hbm [shape: f32[16,128], index: 1, kind: input, shape index: {}]   ;;  %s716_s2 = inlined_call_operand.vmem [shape: s32[16,1], index: 2, kind: input, shape index: {}]   ;;  %s717_s3 = inlined_call_operand.vmem [shape: s32[1,16], index: 3, kind: input, shape index: {}]   ;;  %s718_s4 = inlined_call_operand.hbm [shape: f32[8,128], index: 4, kind: output, shape index: {}]  }
   0x1   :  { %10 = vsyncpa [#allocation5], 0  ;;  %s548_s15 = smov [#allocation3]   ;;  %s500_s19 = scalar_lea.hbm %s715_s1, 256 }
   0x2   :  { %s18_s16 = sshll.u32 %s548_s15, 4  ;;  %p501_p0 = scmp.ne.s32.totalorder %s715_s1, %s500_s19  ;;  %s19_s16 = int_to_ptr.vmem [resolvable:$true] %s18_s16 }
   0x3   :  { %p504_p1 = scmp.lt.u32.totalorder %s500_s19, %s715_s1 }
   0x5   :  { %p506_p2 = pnand %p504_p1, %p501_p0 }
   0x7   :  { %509 = shalt.err (!%p506_p2)
}
   0x8   :  { %s510_s24 = scalar_lea.vmem %s19_s16, 256  ;;  %p515_p4 = scmp.lt.s32.totalorder %s19_s16, %s19_s16 }
   0x9   :  { %p511_p3 = scmp.ne.s32.totalorder %s19_s16, %s510_s24  ;;  %p516_p5 = scmp.lt.s32.totalorder %s510_s24, %s510_s24 }
   0xb   :  { %p517_p6 = por %p516_p5, %p515_p4 }
   0xd   :  { %p518_p7 = pnand %p517_p6, %p511_p3 }
   0xf   :  { %521 = shalt.err (!%p518_p7)
}
  0x10   :  { %s549_s25 = smov 128   ;;  %s550_s26 = smov 8  }
  0x11   :  { %24 = dma.hbm_to_vmem [thread:$0]  %s715_s1, 256, %s19_s16, [#allocation4], %s549_s25, %s549_s25, %s550_s26  }
  0x12   :  { %544 = dma.done.wait [#allocation4], 256  }
  0x13   :  { %545 = vsyncadd [#allocation4], 4294967040  ;;  %v551_v0 = vmov 0   ;;  %v41_v1 = vld [vmem:[#allocation3] sm:$0xff]  ;;  %v42_v2 = vld [vmem:[#allocation3 + $0x8] sm:$0xff]  ;;  %v119_v9 = vlaneseq  ;;  %v552_v13 = vmov 0.0  }
  0x14   :  { %499 = vset.pattern.permute.xlu0 %v551_v0  ;;  %v39_v3 = vld [vmem:[%s714_s0] sm:$0xff]  ;;  %v472_v4 = vpack.c.bf16 %v42_v2, %v41_v1  ;;  %v133_v6 = vld [vmem:[%s716_s2 + $0x8] sm:$0xff]  ;;  %vm183_vm5 = vcmask 130048   ;;  %vm36_vm6 = vcmask 64512   ;;  %s556_s12 = smov 123   ;;  %s557_s13 = smov 122  }
  0x15   :  { %469 = vmatprep.mubr.f32.mxu0 %v39_v3  ;;  %v132_v5 = vld [vmem:[%s716_s2] sm:$0xff]  ;;  %v40_v7 = vld [vmem:[%s714_s0 + $0x8] sm:$0xff]  ;;  %v609_v10 = vand.u32 127, %v119_v9  ;;  %38 = vst.msk [vmem:[#allocation2 + $0x8] sm:$0xff] %vm36_vm6, %v552_v13  ;;  %37 = vst.msk [vmem:[#allocation2] sm:$0xff] %vm36_vm6, %v552_v13  ;;  %s553_s0 = smov 127  }
  0x16   :  { %136 = vperm.xlu0 %499, %v132_v5   ;;  %473 = vmatprep.subr.bf16.mxu0 %v472_v4  ;;  %v456_v11 = vld [vmem:[%s717_s3] ss:$0 sm:$0xff]  ;;  %s554_s2 = smov 125   ;;  %s555_s3 = smov 124   ;;  %vm314_vm14 = vcmask 7168  }
  0x17   :  { %475 = vmatpush3.bf16.xpose.msra.mxu0 %v472_v4  ;;  %vm130_vm0 = vcmp.lt.s32.totalorder %v609_v10, 8  ;;  %vm241_vm7 = vcmp.eq.s32.totalorder %v609_v10, 0  ;;  %vm244_vm8 = vcmp.eq.s32.totalorder %v609_v10, 1  ;;  %vm249_vm9 = vcmp.eq.s32.totalorder %v609_v10, 2  ;;  %s558_s20 = smov [#allocation6]  }
  0x18   :  { %v131_v14 = vsel %vm130_vm0, 1.0, %v552_v13  ;;  %vm254_vm10 = vcmp.eq.s32.totalorder %v609_v10, 3  ;;  %vm259_vm11 = vcmp.eq.s32.totalorder %v609_v10, 4  ;;  %vm264_vm12 = vcmp.eq.s32.totalorder %v609_v10, 5  ;;  %s447_s21 = sshll.u32 %s558_s20, 4  ;;  %s448_s21 = int_to_ptr.vmem [resolvable:$true] %s447_s21 }
  0x19   :  { %vm269_vm13 = vcmp.eq.s32.totalorder %v609_v10, 6  ;;  %s522_s22 = scalar_lea.vmem %s448_s21, 128  ;;  %p527_p9 = scmp.lt.s32.totalorder %s448_s21, %s448_s21 }
  0x1a   :  { %139 = vperm.xlu0 %499, %v133_v6   ;;  %p523_p8 = scmp.ne.s32.totalorder %s448_s21, %s522_s22  ;;  %p528_p10 = scmp.lt.s32.totalorder %s522_s22, %s522_s22 }
  0x1c   :  { %p529_p11 = por %p528_p10, %p527_p9 }
  0x1e   :  { %470 = vmatmul.mubr.f32.vlgmr.msra.gmra.mrb[0].mxu0 %v40_v7  ;;  %p530_p12 = pnand %p529_p11, %p523_p8 }
  0x95   :  { %v137_v8 = vpop.permute.xlu0 %136 }
  0x96   :  { %vm145_vm2 = vcmp.eq.s32.totalorder %v137_v8, %v456_v11 }
  0x97   :  { %v147_v16 = vsel %vm145_vm2, 1.0, %v552_v13 }
  0x98   :  { %v149_v18 = vmul.f32 %v147_v16, %v131_v14 }
  0x99   :  { %v140_v12 = vpop.permute.xlu0 %139 }
  0x9a   :  { %vm146_vm1 = vcmp.eq.s32.totalorder %v140_v12, %v456_v11  ;;  %v151_v28 = vsub.f32 %v131_v14, %v149_v18  ;;  %v210_v46 = vsel %vm183_vm5, %v149_v18, 0.0 }
  0x9b   :  { %v148_v15 = vsel %vm146_vm1, 1.0, %v552_v13 }
  0x9c   :  { %v150_v17 = vmul.f32 %v148_v15, %v131_v14 }
  0x9e   :  { %v152_v24 = vsub.f32 %v131_v14, %v150_v17  ;;  %v213_v50 = vsel %vm183_vm5, %v150_v17, 0.0 }
  0xf1   :  { %v471_v19 = vpop.f32.mrb[0].mxu0 }
  0xf2   :  { %v109_v20 = vpop.f32.mrb[1].mxu0  ;;  %v458_v21 = vadd.f32 -0.45, %v471_v19  ;;  %v176_v25 = vsub.f32 0.55, %v471_v19  ;;  %v225_v36 = vmul.f32 %v471_v19, %v131_v14  ;;  %v217_v47 = vmul.f32 %v471_v19, %v150_v17 }
  0xf3   :  { %v457_v22 = vadd.f32 -0.45, %v109_v20  ;;  %v175_v23 = vsub.f32 0.55, %v109_v20  ;;  %v216_v44 = vmul.f32 %v149_v18, %v109_v20  ;;  %v224_v53 = vmul.f32 %v131_v14, %v109_v20 }
  0xf4   :  { %vm178_vm3 = vcmp.gt.f32.partialorder %v458_v21, 0.0  ;;  %v201_v34 = vmax.f32 %v176_v25, 0.0  ;;  %v191_v39 = vmax.f32 %v458_v21, 0.0  ;;  %v229_v40 = vsel %vm183_vm5, %v225_v36, 0.0 }
  0xf5   :  { %v200_v26 = vmax.f32 %v175_v23, 0.0  ;;  %v180_v27 = vsel %vm178_vm3, 1.0, %v552_v13  ;;  %vm177_vm4 = vcmp.gt.f32.partialorder %v457_v22, 0.0  ;;  %v218_v45 = vsel %vm183_vm5, %v216_v44, 0.0 }
  0xf6   :  { %v182_v29 = vmul.f32 %v180_v27, %v152_v24  ;;  %v179_v30 = vsel %vm177_vm4, 1.0, %v552_v13  ;;  %v203_v38 = vmul.f32 %v201_v34, %v152_v24  ;;  %v193_v42 = vmul.f32 %v191_v39, %v152_v24  ;;  %v275_v24 = vld [vmem:[#allocation2 + $0x8] sm:$0xff]  ;;  %v274_v39 = vld [vmem:[#allocation2] sm:$0xff] }
  0xf7   :  { %v202_v31 = vmul.f32 %v200_v26, %v151_v28  ;;  %v181_v33 = vmul.f32 %v179_v30, %v151_v28  ;;  %v221_v48 = vsel %vm183_vm5, %v217_v47, 0.0  ;;  %v190_v49 = vmax.f32 %v457_v22, 0.0 }
  0xf8   :  { %v187_v32 = vsel %vm183_vm5, %v182_v29, 0.0  ;;  %v207_v41 = vsel %vm183_vm5, %v203_v38, 0.0  ;;  %v197_v43 = vsel %vm183_vm5, %v193_v42, 0.0  ;;  %v226_v54 = vsel %vm183_vm5, %v224_v53, 0.0 }
  0xf9   :  { %188 = vadd.xlane.f32.xlu1 %v187_v32  ;;  %v204_v35 = vsel %vm183_vm5, %v202_v31, 0.0  ;;  %v184_v37 = vsel %vm183_vm5, %v181_v33, 0.0  ;;  %v192_v51 = vmul.f32 %v190_v49, %v151_v28 }
  0xfa   :  { %205 = vadd.xlane.f32.xlu0 %v204_v35 }
  0xfb   :  { %v194_v52 = vsel %vm183_vm5, %v192_v51, 0.0 }
  0xfd   :  { %185 = vadd.xlane.f32.xlu1 %v184_v37 }
  0xfe   :  { %230 = vadd.xlane.f32.xlu0 %v229_v40 }
 0x101   :  { %208 = vadd.xlane.f32.xlu1 %v207_v41 }
 0x105   :  { %198 = vadd.xlane.f32.xlu1 %v197_v43 }
 0x109   :  { %219 = vadd.xlane.f32.xlu1 %v218_v45 }
 0x10d   :  { %211 = vadd.xlane.f32.xlu1 %v210_v46 }
 0x111   :  { %222 = vadd.xlane.f32.xlu1 %v221_v48 }
 0x115   :  { %214 = vadd.xlane.f32.xlu1 %v213_v50 }
 0x119   :  { %195 = vadd.xlane.f32.xlu1 %v194_v52 }
 0x11d   :  { %227 = vadd.xlane.f32.xlu1 %v226_v54 }
 0x186   :  { %v189_v55 = vpop.xlane.xlu1 %188 }
 0x187   :  { %v206_v60 = vpop.xlane.xlu0 %205  ;;  %v243_v63 = vsel %vm241_vm7, %v189_v55, 0.0 }
 0x188   :  { %v245_v16 = vsel %vm244_vm8, %v206_v60, 0.0 }
 0x18a   :  { %v186_v56 = vpop.xlane.xlu1 %185 }
 0x18b   :  { %v231_v4 = vpop.xlane.xlu0 %230  ;;  %v242_v11 = vsel %vm241_vm7, %v186_v56, 0.0 }
 0x18c   :  { %v247_v19 = vadd.f32 %v245_v16, %v242_v11 }
 0x18e   :  { %v209_v57 = vpop.xlane.xlu1 %208 }
 0x18f   :  { %v246_v62 = vsel %vm244_vm8, %v209_v57, 0.0 }
 0x190   :  { %v248_v1 = vadd.f32 %v246_v62, %v243_v63 }
 0x192   :  { %v199_v58 = vpop.xlane.xlu1 %198 }
 0x193   :  { %v251_v0 = vsel %vm249_vm9, %v199_v58, 0.0 }
 0x194   :  { %v253_v5 = vadd.f32 %v251_v0, %v248_v1 }
 0x196   :  { %v220_v59 = vpop.xlane.xlu1 %219 }
 0x197   :  { %v460_v17 = vadd.f32 -1.0, %v220_v59 }
 0x199   :  { %v255_v28 = vsel %vm254_vm10, %v460_v17, 0.0 }
 0x19a   :  { %v212_v61 = vpop.xlane.xlu1 %211 }
 0x19b   :  { %v459_v22 = vadd.f32 -1.0, %v212_v61  ;;  %v237_v32 = vsub.f32 8.0, %v212_v61 }
 0x19d   :  { %v260_v33 = vsel %vm259_vm11, %v459_v22, 0.0  ;;  %v270_v38 = vsel %vm269_vm13, %v237_v32, 0.0 }
 0x19e   :  { %v223_v2 = vpop.xlane.xlu1 %222 }
 0x19f   :  { %v256_v3 = vsel %vm254_vm10, %v223_v2, 0.0  ;;  %v240_v6 = vsub.f32 %v231_v4, %v223_v2 }
 0x1a0   :  { %v258_v7 = vadd.f32 %v256_v3, %v253_v5 }
 0x1a1   :  { %v266_v18 = vsel %vm264_vm12, %v240_v6, 0.0 }
 0x1a2   :  { %v215_v8 = vpop.xlane.xlu1 %214 }
 0x1a3   :  { %v238_v12 = vsub.f32 8.0, %v215_v8  ;;  %v261_v14 = vsel %vm259_vm11, %v215_v8, 0.0 }
 0x1a4   :  { %v263_v15 = vadd.f32 %v261_v14, %v258_v7 }
 0x1a5   :  { %v271_v23 = vsel %vm269_vm13, %v238_v12, 0.0 }
 0x1a6   :  { %v268_v20 = vadd.f32 %v266_v18, %v263_v15  ;;  %v196_v21 = vpop.xlane.xlu1 %195 }
 0x1a7   :  { %v250_v25 = vsel %vm249_vm9, %v196_v21, 0.0 }
 0x1a8   :  { %v273_v26 = vadd.f32 %v271_v23, %v268_v20  ;;  %v252_v27 = vadd.f32 %v250_v25, %v247_v19 }
 0x1aa   :  { %v277_v29 = vadd.f32 %v275_v24, %v273_v26  ;;  %v257_v30 = vadd.f32 %v255_v28, %v252_v27  ;;  %v228_v31 = vpop.xlane.xlu1 %227 }
 0x1ab   :  { %v239_v34 = vsub.f32 %v228_v31, %v220_v59 }
 0x1ac   :  { %280 = vst.msk [vmem:[#allocation2 + $0x8] sm:$0xff] %vm36_vm6, %v277_v29  ;;  %v262_v35 = vadd.f32 %v260_v33, %v257_v30 }
 0x1ad   :  { %v265_v36 = vsel %vm264_vm12, %v239_v34, 0.0 }
 0x1ae   :  { %v267_v37 = vadd.f32 %v265_v36, %v262_v35 }
 0x1b0   :  { %v272_v40 = vadd.f32 %v270_v38, %v267_v37 }
 0x1b2   :  { %v276_v41 = vadd.f32 %v274_v39, %v272_v40 }
 0x1b3   :  { %v285_v42 = vld [vmem:[#allocation2 + $0x8] sm:$0xff] }
 0x1b4   :  { %279 = vst.msk [vmem:[#allocation2] sm:$0xff] %vm36_vm6, %v276_v41  ;;  %298 = vrot.lane.b32.xlu0 %v285_v42, %s553_s0  ;;  %v346_v44 = vmul.f32 0.0, %v285_v42  ;;  %vm328_vm15 = vcmp.lt.f32.partialorder %v285_v42, 2.0  ;;  %vm289_vm1 = vcmp.ge.f32.partialorder %v285_v42, 2.0 }
 0x1b5   :  { %v330_v54 = vsel %vm328_vm15, 1.0, %v552_v13  ;;  %v291_v60 = vsel %vm289_vm1, 1.0, %v552_v13 }
 0x1b6   :  { %v332_v56 = vmul.f32 0.0, %v330_v54  ;;  %v293_v62 = vmul.f32 0.0, %v291_v60 }
 0x1b8   :  { %v334_v58 = vsel %vm314_vm14, %v332_v56, 0.0 }
 0x1bb   :  { %v284_v43 = vld [vmem:[#allocation2] sm:$0xff] }
 0x1bc   :  { %349 = vrot.lane.b32.xlu0 %v284_v43, %s554_s2  ;;  %296 = vrot.lane.b32.xlu1 %v284_v43, %s553_s0  ;;  %vm327_vm0 = vcmp.lt.f32.partialorder %v284_v43, 2.0  ;;  %vm288_vm2 = vcmp.ge.f32.partialorder %v284_v43, 2.0 }
 0x1bd   :  { %v329_v55 = vsel %vm327_vm0, 1.0, %v552_v13  ;;  %v290_v2 = vsel %vm288_vm2, 1.0, %v552_v13 }
 0x1be   :  { %v333_v57 = vsel %vm314_vm14, %v329_v55, 0.0 }
 0x1bf   :  { %v335_v59 = vadd.f32 %v334_v58, %v333_v57 }
 0x1c0   :  { %367 = vrot.lane.b32.xlu0 %v284_v43, %s555_s3  ;;  %351 = vrot.lane.b32.xlu1 %v346_v44, %s554_s2 }
 0x1c4   :  { %385 = vrot.lane.b32.xlu0 %v284_v43, %s556_s12 }
 0x1c8   :  { %403 = vrot.lane.b32.xlu0 %v284_v43, %s557_s13 }
 0x226   :  { %v299_v45 = vpop.permute.xlu0 %298 }
 0x227   :  { %v303_v46 = vadd.f32 %v299_v45, %v285_v42 }
 0x229   :  { %308 = vrot.lane.b32.xlu1 %v303_v46, %s553_s0 }
 0x22e   :  { %v297_v47 = vpop.permute.xlu1 %296  ;;  %v350_v49 = vpop.permute.xlu0 %349 }
 0x22f   :  { %v302_v48 = vadd.f32 %v297_v47, %v284_v43  ;;  %v355_v51 = vsel %vm314_vm14, %v350_v49, 0.0 }
 0x231   :  { %306 = vrot.lane.b32.xlu1 %v302_v48, %s553_s0 }
 0x232   :  { %v352_v50 = vpop.permute.xlu1 %351  ;;  %v368_v63 = vpop.permute.xlu0 %367 }
 0x233   :  { %v356_v52 = vsel %vm314_vm14, %v352_v50, 0.0  ;;  %v373_v12 = vsel %vm314_vm14, %v368_v63, 0.0 }
 0x234   :  { %v357_v53 = vadd.f32 %v356_v52, %v355_v51 }
 0x235   :  { %369 = vrot.lane.b32.xlu1 %v346_v44, %s555_s3 }
 0x236   :  { %358 = vadd.xlane.f32.xlu0 %v357_v53  ;;  %v386_v6 = vpop.permute.xlu0 %385 }
 0x237   :  { %v391_v16 = vsel %vm314_vm14, %v386_v6, 0.0 }
 0x239   :  { %387 = vrot.lane.b32.xlu1 %v346_v44, %s556_s12 }
 0x23a   :  { %v404_v13 = vpop.permute.xlu0 %403 }
 0x23b   :  { %v409_v20 = vsel %vm314_vm14, %v404_v13, 0.0 }
 0x23d   :  { %405 = vrot.lane.b32.xlu1 %v346_v44, %s557_s13 }
 0x261   :  { %336 = vadd.xlane.f32.xlu1 %v335_v59 }
 0x29b   :  { %v309_v61 = vpop.permute.xlu1 %308 }
 0x29c   :  { %v313_v0 = vmul.f32 %v309_v61, %v293_v62 }
 0x29e   :  { %v316_v5 = vsel %vm314_vm14, %v313_v0, 0.0 }
 0x2a3   :  { %v307_v1 = vpop.permute.xlu1 %306 }
 0x2a4   :  { %v312_v3 = vmul.f32 %v307_v1, %v290_v2 }
 0x2a6   :  { %v315_v4 = vsel %vm314_vm14, %v312_v3, 0.0 }
 0x2a7   :  { %v370_v7 = vpop.permute.xlu1 %369  ;;  %v317_v8 = vadd.f32 %v316_v5, %v315_v4 }
 0x2a8   :  { %v374_v11 = vsel %vm314_vm14, %v370_v7, 0.0 }
 0x2a9   :  { %318 = vadd.xlane.f32.xlu0 %v317_v8  ;;  %v375_v15 = vadd.f32 %v374_v11, %v373_v12 }
 0x2ab   :  { %v388_v14 = vpop.permute.xlu1 %387 }
 0x2ac   :  { %v392_v17 = vsel %vm314_vm14, %v388_v14, 0.0 }
 0x2ad   :  { %376 = vadd.xlane.f32.xlu0 %v375_v15  ;;  %v393_v18 = vadd.f32 %v392_v17, %v391_v16  ;;  %v120_v17 = vshrl.u32 %v119_v9, 7 }
 0x2af   :  { %v406_v19 = vpop.permute.xlu1 %405  ;;  %394 = vadd.xlane.f32.xlu1 %v393_v18  ;;  %vm438_vm3 = vcmp.eq.s32.totalorder %v120_v17, 0 }
 0x2b0   :  { %v410_v21 = vsel %vm314_vm14, %v406_v19, 0.0 }
 0x2b1   :  { %v411_v22 = vadd.f32 %v410_v21, %v409_v20 }
 0x2b3   :  { %412 = vadd.xlane.f32.xlu0 %v411_v22 }
 0x2c3   :  { %v359_v24 = vpop.xlane.xlu0 %358 }
 0x2c4   :  { %v360_v26 = vrot.slane %v359_v24, 4 }
 0x2c6   :  { %v361_v28 = vadd.f32 %v360_v26, %v359_v24 }
 0x2c8   :  { %v362_v31 = vrot.slane %v361_v28, 2 }
 0x2ca   :  { %v363_v38 = vadd.f32 %v362_v31, %v361_v28 }
 0x2cc   :  { %v364_v47 = vrot.slane %v363_v38, 1 }
 0x2ce   :  { %v365_v56 = vadd.f32 %v364_v47, %v363_v38 }
 0x2ee   :  { %v337_v23 = vpop.xlane.xlu1 %336 }
 0x2ef   :  { %v338_v25 = vrot.slane %v337_v23, 4 }
 0x2f1   :  { %v339_v27 = vadd.f32 %v338_v25, %v337_v23 }
 0x2f3   :  { %v340_v29 = vrot.slane %v339_v27, 2 }
 0x2f5   :  { %v341_v35 = vadd.f32 %v340_v29, %v339_v27 }
 0x2f7   :  { %v342_v43 = vrot.slane %v341_v35, 1 }
 0x2f9   :  { %v343_v53 = vadd.f32 %v342_v43, %v341_v35 }
 0x336   :  { %v319_v30 = vpop.xlane.xlu0 %318 }
 0x337   :  { %v320_v32 = vrot.slane %v319_v30, 4 }
 0x339   :  { %v321_v33 = vadd.f32 %v320_v32, %v319_v30 }
 0x33a   :  { %v377_v34 = vpop.xlane.xlu0 %376 }
 0x33b   :  { %v322_v36 = vrot.slane %v321_v33, 2  ;;  %v378_v37 = vrot.slane %v377_v34, 4 }
 0x33c   :  { %v395_v39 = vpop.xlane.xlu1 %394 }
 0x33d   :  { %v379_v40 = vadd.f32 %v378_v37, %v377_v34  ;;  %v396_v41 = vrot.slane %v395_v39, 4  ;;  %v323_v42 = vadd.f32 %v322_v36, %v321_v33 }
 0x33f   :  { %v380_v44 = vrot.slane %v379_v40, 2  ;;  %v397_v45 = vadd.f32 %v396_v41, %v395_v39  ;;  %v324_v46 = vrot.slane %v323_v42, 1 }
 0x340   :  { %v413_v48 = vpop.xlane.xlu0 %412 }
 0x341   :  { %v398_v49 = vrot.slane %v397_v45, 2  ;;  %v414_v50 = vrot.slane %v413_v48, 4  ;;  %v325_v51 = vadd.f32 %v324_v46, %v323_v42  ;;  %v381_v52 = vadd.f32 %v380_v44, %v379_v40 }
 0x343   :  { %v399_v54 = vadd.f32 %v398_v49, %v397_v45  ;;  %v415_v55 = vadd.f32 %v414_v50, %v413_v48  ;;  %476 = vpush %v325_v51  ;;  %v382_v57 = vrot.slane %v381_v52, 1 }
 0x344   :  { %478 = vpush %v343_v53 }
 0x345   :  { %v416_v58 = vrot.slane %v415_v55, 2  ;;  %480 = vpush %v365_v56  ;;  %v383_v59 = vadd.f32 %v382_v57, %v381_v52  ;;  %v400_v60 = vrot.slane %v399_v54, 1 }
 0x347   :  { %v417_v61 = vadd.f32 %v416_v58, %v415_v55  ;;  %482 = vpush %v383_v59  ;;  %v401_v62 = vadd.f32 %v400_v60, %v399_v54 }
 0x349   :  { %484 = vpush %v401_v62  ;;  %v418_v63 = vrot.slane %v417_v61, 1 }
 0x34b   :  { %v419_v0 = vadd.f32 %v418_v63, %v417_v61 }
 0x34d   :  { %486 = vpush %v419_v0 }
 0x374   :  { %s477_s14 = spop %476 }
 0x375   :  { %v421_v1 = vstv %s477_s14  ;;  %s479_s15 = spop %478 }
 0x376   :  { %v422_v2 = vsel %vm241_vm7, %v421_v1, 0.0  ;;  %v423_v3 = vstv %s479_s15  ;;  %s481_s16 = spop %480 }
 0x377   :  { %v424_v4 = vsel %vm244_vm8, %v423_v3, 0.0  ;;  %v426_v5 = vstv %s481_s16 }
 0x378   :  { %v425_v6 = vadd.f32 %v424_v4, %v422_v2  ;;  %s483_s17 = spop %482  ;;  %v427_v7 = vsel %vm249_vm9, %v426_v5, 0.0 }
 0x379   :  { %v429_v8 = vstv %s483_s17 }
 0x37a   :  { %v428_v11 = vadd.f32 %v427_v7, %v425_v6  ;;  %v430_v12 = vsel %vm254_vm10, %v429_v8, 0.0  ;;  %s485_s18 = spop %484 }
 0x37b   :  { %v432_v14 = vstv %s485_s18 }
 0x37c   :  { %v431_v15 = vadd.f32 %v430_v12, %v428_v11  ;;  %v433_v16 = vsel %vm259_vm11, %v432_v14, 0.0 }
 0x37e   :  { %s487_s19 = spop %486  ;;  %v434_v13 = vadd.f32 %v433_v16, %v431_v15 }
 0x37f   :  { %v435_v18 = vstv %s487_s19 }
 0x380   :  { %v436_v19 = vsel %vm264_vm12, %v435_v18, 0.0 }
 0x381   :  { %v437_v20 = vadd.f32 %v436_v19, %v434_v13 }
 0x383   :  { %v439_v21 = vsel %vm438_vm3, %v437_v20, 0.0 }
 0x384   :  { %440 = vst [vmem:[#allocation6] sm:$0xff] %v439_v21 }
 0x385   :  { %533 = shalt.err (!%p530_p12)
}
 0x386   :  { %s534_s25 = scalar_lea.hbm %s718_s4, 128 }
 0x387   :  { %p535_p13 = scmp.ne.s32.totalorder %s718_s4, %s534_s25  ;;  %p538_p0 = scmp.lt.u32.totalorder %s534_s25, %s718_s4 }
 0x389   :  { %p540_p1 = pnand %p538_p0, %p535_p13 }
 0x38b   :  { %543 = shalt.err (!%p540_p1)
}
 0x38c   :  { %450 = dma.vmem_to_hbm [thread:$0]  %s448_s21, 128, %s718_s4, [#allocation5]  }
 0x38d   :  { %546 = dma.done.wait [#allocation5], 128  }
 0x38e   :  { %547 = vsyncadd [#allocation5], 4294967168 }
 0x38f   :  { %454 = vsyncpa [#allocation4], 1 }
 0x390   :  { %455 = vsyncpa [#allocation5], 1 }

</bundles_post_ra>
